<compile_context>
chip_gen: v5e
topology: v5e:2x2
jax: 0.10.0
libtpu: 0.0.40
codegen_flags: <defaults>
</compile_context>

<pallas_src>
import math
import jax
import jax.numpy as jnp
from jax.experimental import pallas as pl
from jax.experimental.pallas import tpu as pltpu


def _round_up(x, m):
    return ((x + m - 1) // m) * m


def _fssn_softmax_kernel(x_ref, w1_ref, b1_ref, w2_ref, b2_ref, o_ref):
    # ---- Layer 1: sigmoid(x @ W1 + b1) --------------------------------------
    z1 = jnp.dot(x_ref[...], w1_ref[...],
                 preferred_element_type=jnp.float32)          # (TB, Hp) on MXU
    z1 = z1 + b1_ref[...].astype(jnp.float32)                 # (1, Hp) broadcast
    h = jax.nn.sigmoid(z1)                                    # EUP (exp/recip)

    # ---- Layer 2: softmax(h @ W2 + b2, axis=-1) -----------------------------
    z2 = jnp.dot(h, w2_ref[...].astype(jnp.float32),
                 preferred_element_type=jnp.float32)          # (TB, Ep)
    z2 = z2 + b2_ref[...].astype(jnp.float32)                 # padded lanes ~ -1e30

    # numerically stable softmax over the last (ensemble) axis == torch dim=1
    z_max = jnp.max(z2, axis=-1, keepdims=True)
    e = jnp.exp(z2 - z_max)                                   # padded lanes -> 0
    denom = jnp.sum(e, axis=-1, keepdims=True)
    # exact reciprocal keeps ~1e-5 accuracy vs. the reference.
    o_ref[...] = (e * pl.reciprocal(denom, approx=False)).astype(o_ref.dtype)


def fssn_softmax_forward(x, w1_t, b1, w2_t, b2, *, tb=512):
    """x: (B, D); w1_t: (D, H); b1: (1, H); w2_t: (H, E); b2: (1, E)."""
    B, D = x.shape
    H = w1_t.shape[1]
    E = w2_t.shape[1]

    # Lane-dense padding of the hidden and ensemble (output) dims.
    H_pad = _round_up(H, 128)
    E_pad = _round_up(E, 128)

    # Batch tile: large to amortize the ~0.35us/step pipeline overhead, but no
    # larger than the (8-aligned) batch itself.  Batch is padded to a multiple
    # of the tile so the (8,128) block rule is satisfied exactly.
    TB = min(tb, _round_up(B, 8))
    B_pad = _round_up(B, TB)
    n_tiles = B_pad // TB

    xp = jnp.pad(x, ((0, B_pad - B), (0, 0)))
    w1p = jnp.pad(w1_t, ((0, 0), (0, H_pad - H)))                 # zero cols
    b1p = jnp.pad(b1, ((0, 0), (0, H_pad - H)))                   # zero (dead)
    w2p = jnp.pad(w2_t, ((0, H_pad - H), (0, E_pad - E)))         # zero rows/cols
    b2p = jnp.pad(b2, ((0, 0), (0, E_pad - E)),
                  constant_values=-1e30)                          # kill padded lanes

    out_pad = pl.pallas_call(
        _fssn_softmax_kernel,
        out_shape=jax.ShapeDtypeStruct((B_pad, E_pad), jnp.float32),
        grid_spec=pltpu.PrefetchScalarGridSpec(
            num_scalar_prefetch=0,
            grid=(n_tiles,),
            in_specs=[
                pl.BlockSpec((TB, D), lambda i: (i, 0)),       # x: batch-tiled
                pl.BlockSpec((D, H_pad), lambda i: (0, 0)),    # weights resident
                pl.BlockSpec((1, H_pad), lambda i: (0, 0)),
                pl.BlockSpec((H_pad, E_pad), lambda i: (0, 0)),
                pl.BlockSpec((1, E_pad), lambda i: (0, 0)),
            ],
            out_specs=pl.BlockSpec((TB, E_pad), lambda i: (i, 0)),
        ),
        compiler_params=pltpu.CompilerParams(
            # batch tiles are independent -> shard across TCs on v7x megacore
            dimension_semantics=("parallel",),
        ),
    )(xp, w1p, b1p, w2p, b2p)

    return out_pad[:B, :E]


def init_fssn_softmax_params(key, n_inputs, n_ensemble, n_nodes=50):
    """Deterministic init matching Suppression_Layer.reset_parameters:
       xavier_uniform(gain=sqrt(3)) for weights, U(-1/sqrt(fan_in), ..) bias."""
    hidden = max(n_nodes, 3 * n_ensemble)
    k1, k2, k3, k4 = jax.random.split(key, 4)

    def xavier_uniform(k, fan_in, fan_out, gain):
        bound = gain * math.sqrt(6.0 / (fan_in + fan_out))
        # PyTorch weight shape is (fan_out, fan_in); sample in that shape then
        # transpose so the kernel consumes (fan_in, fan_out).
        w = jax.random.uniform(k, (fan_out, fan_in), jnp.float32, -bound, bound)
        return w.T

    def bias_uniform(k, fan_in, fan_out):
        bound = 1.0 / math.sqrt(fan_in)
        return jax.random.uniform(k, (1, fan_out), jnp.float32, -bound, bound)

    gain = math.sqrt(3.0)
    w1_t = xavier_uniform(k1, n_inputs, hidden, gain)    # (n_inputs, hidden)
    b1 = bias_uniform(k2, n_inputs, hidden)              # (1, hidden)
    w2_t = xavier_uniform(k3, hidden, n_ensemble, gain)  # (hidden, n_ensemble)
    b2 = bias_uniform(k4, hidden, n_ensemble)            # (1, n_ensemble)
    return w1_t, b1, w2_t, b2


if __name__ == "__main__":
    # Small, module-consistent shapes: batch=8, n_inputs=32, n_ensemble=4
    # -> hidden = max(50, 12) = 50.
    B, n_inputs, n_ensemble, n_nodes = 8, 32, 4, 50

    key = jax.random.PRNGKey(0)
    kx, kp = jax.random.split(key)
    x = jax.random.normal(kx, (B, n_inputs), dtype=jnp.float32)
    w1_t, b1, w2_t, b2 = init_fssn_softmax_params(kp, n_inputs, n_ensemble, n_nodes)

    out = fssn_softmax_forward(x, w1_t, b1, w2_t, b2)
    out = jax.block_until_ready(out)

    # Reference check in plain JAX (same math) for correctness.
    h_ref = jax.nn.sigmoid(x @ w1_t + b1)
    ref = jax.nn.softmax(h_ref @ w2_t + b2, axis=-1)
    assert out.shape == (B, n_ensemble)
    assert jnp.allclose(out, ref, atol=1e-5, rtol=1e-5)
    # rows of a softmax sum to 1
    assert jnp.allclose(jnp.sum(out, axis=-1), jnp.ones((B,)), atol=1e-5)

    # TODO(synk): if the surrounding model allows bf16 activations/weights,
    # feed bf16 into the matmuls (keep f32 accumulation/elementwise) for
    # higher MXU throughput and halved HBM traffic on v6e/v7x.

    print("KERNEL_OK")
</pallas_src>

<mosaic_0001>
module attributes {stable_mosaic.version = 11 : i64} {
  func.func @_fssn_softmax_kernel(%arg0: i32, %arg1: memref<8x32xf32, #tpu.memory_space<vmem>>, %arg2: memref<32x128xf32, #tpu.memory_space<vmem>>, %arg3: memref<1x128xf32, #tpu.memory_space<vmem>>, %arg4: memref<128x128xf32, #tpu.memory_space<vmem>>, %arg5: memref<1x128xf32, #tpu.memory_space<vmem>>, %arg6: memref<8x128xf32, #tpu.memory_space<vmem>>) attributes {dimension_semantics = [#tpu.dimension_semantics<parallel>], iteration_bounds = array<i64: 1>, scalar_prefetch = 0 : i64, scratch_operands = 0 : i64, tpu.core_type = #tpu.core_type<tc>, window_params = [{transform_indices = @transform_0, window_bounds = array<i64: 8, 32>}, {pipeline_mode = #tpu.pipeline_mode<synchronous>, transform_indices = @transform_1, window_bounds = array<i64: 32, 128>}, {pipeline_mode = #tpu.pipeline_mode<synchronous>, transform_indices = @transform_2, window_bounds = array<i64: 1, 128>}, {pipeline_mode = #tpu.pipeline_mode<synchronous>, transform_indices = @transform_3, window_bounds = array<i64: 128, 128>}, {pipeline_mode = #tpu.pipeline_mode<synchronous>, transform_indices = @transform_4, window_bounds = array<i64: 1, 128>}, {transform_indices = @transform_5, window_bounds = array<i64: 8, 128>}]} {
    %c0 = arith.constant 0 : index
    %c0_0 = arith.constant 0 : index
    %0 = vector.load %arg1[%c0, %c0_0] : memref<8x32xf32, #tpu.memory_space<vmem>>, vector<8x32xf32>
    %c0_1 = arith.constant 0 : index
    %c0_2 = arith.constant 0 : index
    %1 = vector.load %arg2[%c0_1, %c0_2] : memref<32x128xf32, #tpu.memory_space<vmem>>, vector<32x128xf32>
    %cst = arith.constant dense<0.000000e+00> : vector<8x128xf32>
    %2 = tpu.matmul %0, %1, %cst {dimension_numbers = #tpu.dot_dimension_numbers<[1], [0], [0], [1], [0, 0, 1, 1], [], []>} : vector<8x32xf32>, vector<32x128xf32>, vector<8x128xf32> -> vector<8x128xf32>
    %c0_3 = arith.constant 0 : index
    %c0_4 = arith.constant 0 : index
    %3 = vector.load %arg3[%c0_3, %c0_4] : memref<1x128xf32, #tpu.memory_space<vmem>>, vector<1x128xf32>
    %4 = vector.broadcast %3 : vector<1x128xf32> to vector<8x128xf32>
    %5 = arith.addf %2, %4 : vector<8x128xf32>
    %6 = arith.negf %5 : vector<8x128xf32>
    %7 = math.exp %6 : vector<8x128xf32>
    %cst_5 = arith.constant 1.000000e+00 : f32
    %8 = vector.broadcast %cst_5 : f32 to vector<8x128xf32>
    %9 = arith.addf %8, %7 : vector<8x128xf32>
    %10 = arith.divf %8, %9 : vector<8x128xf32>
    %c0_6 = arith.constant 0 : index
    %c0_7 = arith.constant 0 : index
    %11 = vector.load %arg4[%c0_6, %c0_7] : memref<128x128xf32, #tpu.memory_space<vmem>>, vector<128x128xf32>
    %cst_8 = arith.constant dense<0.000000e+00> : vector<8x128xf32>
    %12 = tpu.matmul %10, %11, %cst_8 {dimension_numbers = #tpu.dot_dimension_numbers<[1], [0], [0], [1], [0, 0, 1, 1], [], []>} : vector<8x128xf32>, vector<128x128xf32>, vector<8x128xf32> -> vector<8x128xf32>
    %c0_9 = arith.constant 0 : index
    %c0_10 = arith.constant 0 : index
    %13 = vector.load %arg5[%c0_9, %c0_10] : memref<1x128xf32, #tpu.memory_space<vmem>>, vector<1x128xf32>
    %14 = vector.broadcast %13 : vector<1x128xf32> to vector<8x128xf32>
    %15 = arith.addf %12, %14 : vector<8x128xf32>
    %cst_11 = arith.constant dense<0xFF800000> : vector<8xf32>
    %16 = vector.multi_reduction <maximumf>, %15, %cst_11 [1] : vector<8x128xf32> to vector<8xf32>
    %17 = vector.shape_cast %16 : vector<8xf32> to vector<8x1xf32>
    %18 = vector.broadcast %17 : vector<8x1xf32> to vector<8x128xf32>
    %19 = arith.subf %15, %18 : vector<8x128xf32>
    %20 = math.exp %19 : vector<8x128xf32>
    %cst_12 = arith.constant dense<0.000000e+00> : vector<8xf32>
    %21 = vector.multi_reduction <add>, %20, %cst_12 [1] : vector<8x128xf32> to vector<8xf32>
    %22 = vector.shape_cast %21 : vector<8xf32> to vector<8x1xf32>
    %23 = tpu.reciprocal %22 : vector<8x1xf32> -> vector<8x1xf32>
    %24 = vector.broadcast %23 : vector<8x1xf32> to vector<8x128xf32>
    %25 = arith.mulf %20, %24 : vector<8x128xf32>
    %c0_13 = arith.constant 0 : index
    %c0_14 = arith.constant 0 : index
    %26 = vector.load %arg6[%c0_13, %c0_14] : memref<8x128xf32, #tpu.memory_space<vmem>>, vector<8x128xf32>
    tpu.vector_store %arg6[%c0_13, %c0_14], %25 {strides = array<i32>} : memref<8x128xf32, #tpu.memory_space<vmem>>, vector<8x128xf32>,
    return
  }
  func.func @transform_0(%arg0: i32) -> (i32, i32) {
    %c0_i32 = arith.constant 0 : i32
    %c0_i32_0 = arith.constant 0 : i32
    return %arg0, %c0_i32 : i32, i32
  }
  func.func @transform_1(%arg0: i32) -> (i32, i32) {
    %c0_i32 = arith.constant 0 : i32
    %c0_i32_0 = arith.constant 0 : i32
    %c0_i32_1 = arith.constant 0 : i32
    return %c0_i32, %c0_i32_0 : i32, i32
  }
  func.func @transform_2(%arg0: i32) -> (i32, i32) {
    %c0_i32 = arith.constant 0 : i32
    %c0_i32_0 = arith.constant 0 : i32
    %c0_i32_1 = arith.constant 0 : i32
    return %c0_i32, %c0_i32_0 : i32, i32
  }
  func.func @transform_3(%arg0: i32) -> (i32, i32) {
    %c0_i32 = arith.constant 0 : i32
    %c0_i32_0 = arith.constant 0 : i32
    %c0_i32_1 = arith.constant 0 : i32
    return %c0_i32, %c0_i32_0 : i32, i32
  }
  func.func @transform_4(%arg0: i32) -> (i32, i32) {
    %c0_i32 = arith.constant 0 : i32
    %c0_i32_0 = arith.constant 0 : i32
    %c0_i32_1 = arith.constant 0 : i32
    return %c0_i32, %c0_i32_0 : i32, i32
  }
  func.func @transform_5(%arg0: i32) -> (i32, i32) {
    %c0_i32 = arith.constant 0 : i32
    %c0_i32_0 = arith.constant 0 : i32
    return %arg0, %c0_i32 : i32, i32
  }
}

</mosaic_0001>

<bundles_post_ra>
// kernel: tpu_custom_call.1
= control target key start
LH: loop header
LB: loop body
LE: loop exit
PB: predicated region body
PF: predicated region fallthrough
CT: control target
= control target key end

     0   :  { %10 = vsyncpa [#allocation3], 0  ;;  %s373_s0 = inlined_call_operand.hbm [shape: f32[8,32], index: 0, kind: input, shape index: {}]   ;;  %s374_s1 = inlined_call_operand.hbm [shape: f32[32,128], index: 1, kind: input, shape index: {}]   ;;  %s375_s2 = inlined_call_operand.vmem [shape: f32[1,128], index: 2, kind: input, shape index: {}]   ;;  %s376_s3 = inlined_call_operand.hbm [shape: f32[128,128], index: 3, kind: input, shape index: {}]   ;;  %s377_s4 = inlined_call_operand.vmem [shape: f32[1,128], index: 4, kind: input, shape index: {}]   ;;  %s378_s5 = inlined_call_operand.hbm [shape: f32[8,128], index: 5, kind: output, shape index: {}]  }
   0x1   :  { %11 = vsyncpa [#allocation6], 0  ;;  %s28_s20 = sshll.u32 %s374_s1, 4  ;;  %s29_s20 = int_to_ptr.hbm [resolvable:$true] %s28_s20 }
   0x2   :  { %12 = vsyncpa [#allocation4], 0  ;;  %s319_s21 = smov [#allocation5]   ;;  %s18_s25 = sshll.u32 %s373_s0, 4  ;;  %s19_s25 = int_to_ptr.hbm [resolvable:$true] %s18_s25 }
   0x3   :  { %s30_s22 = sshll.u32 %s319_s21, 4  ;;  %s320_s26 = smov 128   ;;  %s31_s22 = int_to_ptr.vmem [resolvable:$true] %s30_s22 }
   0x4   :  { %s321_s27 = smov 8   ;;  %s322_s28 = smov [#allocation2]  }
   0x5   :  { %36 = dma.hbm_to_vmem [thread:$0]  %s29_s20, 512, %s31_s22, [#allocation6], %s320_s26, %s320_s26, %s321_s27  }
   0x6   :  { %s20_s29 = sshll.u32 %s322_s28, 4  ;;  %s43_s7 = sshll.u32 %s376_s3, 4  ;;  %s21_s29 = int_to_ptr.vmem [resolvable:$true] %s20_s29  ;;  %s44_s7 = int_to_ptr.hbm [resolvable:$true] %s43_s7 }
   0x7   :  { %23 = dma.hbm_to_vmem [thread:$0]  %s19_s25, 128, %s21_s29, [#allocation3]  }
   0x8   :  { %s323_s1 = smov [#allocation7]  }
   0x9   :  { %s45_s8 = sshll.u32 %s323_s1, 4  ;;  %s46_s8 = int_to_ptr.vmem [resolvable:$true] %s45_s8 }
   0xa   :  { %51 = dma.hbm_to_vmem [thread:$0]  %s44_s7, 2048, %s46_s8, [#allocation6], %s320_s26, %s320_s26, %s321_s27  }
   0xb   :  { %313 = dma.done.wait [#allocation3], 128  }
   0xc   :  { %314 = vsyncadd [#allocation3], 4294967168 }
   0xd   :  { %315 = dma.done.wait [#allocation6], 2560  }
   0xe   :  { %316 = vsyncadd [#allocation6], 4294964736  ;;  %v70_v0 = vld [vmem:[#allocation5 + $0x18] sm:$0xff]  ;;  %v69_v1 = vld [vmem:[#allocation5 + $0x10] sm:$0xff]  ;;  %vm75_vm0 = vcmask 261120   ;;  %s188_s13 = sshll.u32 %s378_s5, 4  ;;  %s189_s13 = int_to_ptr.hbm [resolvable:$true] %s188_s13 }
   0xf   :  { %91 = vmatpush.msra.mxu0 %v70_v0  ;;  %v68_v2 = vld [vmem:[#allocation5 + $0x8] sm:$0xff]  ;;  %v67_v3 = vld [vmem:[#allocation5] sm:$0xff]  ;;  %v66_v4 = vld [vmem:[#allocation2] sm:$0xff] }
  0x10   :  { %v133_v5 = vld [vmem:[#allocation7 + $0x78] sm:$0xff]  ;;  %v132_v6 = vld [vmem:[#allocation7 + $0x70] sm:$0xff]  ;;  %v131_v7 = vld [vmem:[#allocation7 + $0x68] sm:$0xff] }
  0x11   :  { %92 = vmatpush.msra.mxu0 %v69_v1  ;;  %138 = vmatpush.msra.mxu1 %v133_v5  ;;  %v130_v8 = vld [vmem:[#allocation7 + $0x60] sm:$0xff]  ;;  %v129_v9 = vld [vmem:[#allocation7 + $0x58] sm:$0xff]  ;;  %v128_v10 = vld [vmem:[#allocation7 + $0x50] sm:$0xff] }
  0x12   :  { %v127_v11 = vld [vmem:[#allocation7 + $0x48] sm:$0xff]  ;;  %v126_v12 = vld [vmem:[#allocation7 + $0x40] sm:$0xff]  ;;  %v125_v13 = vld [vmem:[#allocation7 + $0x38] sm:$0xff] }
  0x13   :  { %93 = vmatpush.msra.mxu0 %v68_v2  ;;  %139 = vmatpush.msra.mxu1 %v132_v6  ;;  %v124_v14 = vld [vmem:[#allocation7 + $0x30] sm:$0xff]  ;;  %v123_v15 = vld [vmem:[#allocation7 + $0x28] sm:$0xff]  ;;  %v122_v16 = vld [vmem:[#allocation7 + $0x20] sm:$0xff] }
  0x14   :  { %v121_v17 = vld [vmem:[#allocation7 + $0x18] sm:$0xff]  ;;  %v120_v18 = vld [vmem:[#allocation7 + $0x10] sm:$0xff]  ;;  %v119_v19 = vld [vmem:[#allocation7 + $0x8] sm:$0xff] }
  0x15   :  { %94 = vmatpush.msra.mxu0 %v67_v3  ;;  %140 = vmatpush.msra.mxu1 %v131_v7  ;;  %v118_v20 = vld [vmem:[#allocation7] sm:$0xff]  ;;  %v207_v21 = vld [vmem:[%s375_s2] ss:$0 sm:$0xff] }
  0x16   :  { %199 = vmatmul.msk.f32.vlgmr.msra.gmra.mxu0 %vm75_vm0, %v66_v4  ;;  %v208_v37 = vld [vmem:[%s377_s4] ss:$0 sm:$0xff]  ;;  %s324_s4 = smov [#allocation8]  }
  0x17   :  { %141 = vmatpush.msra.mxu1 %v130_v8  ;;  %s186_s10 = sshll.u32 %s324_s4, 4  ;;  %s187_s10 = int_to_ptr.vmem [resolvable:$true] %s186_s10 }
  0x19   :  { %142 = vmatpush.msra.mxu1 %v129_v9 }
  0x1b   :  { %143 = vmatpush.msra.mxu1 %v128_v10 }
  0x1d   :  { %144 = vmatpush.msra.mxu1 %v127_v11 }
  0x1f   :  { %145 = vmatpush.msra.mxu1 %v126_v12 }
  0x21   :  { %146 = vmatpush.msra.mxu1 %v125_v13 }
  0x23   :  { %147 = vmatpush.msra.mxu1 %v124_v14 }
  0x25   :  { %148 = vmatpush.msra.mxu1 %v123_v15 }
  0x27   :  { %149 = vmatpush.msra.mxu1 %v122_v16 }
  0x29   :  { %150 = vmatpush.msra.mxu1 %v121_v17 }
  0x2b   :  { %151 = vmatpush.msra.mxu1 %v120_v18 }
  0x2d   :  { %152 = vmatpush.msra.mxu1 %v119_v19 }
  0x2f   :  { %153 = vmatpush.msra.mxu1 %v118_v20 }
  0x93   :  { %v96_v22 = vpop.f32.mrf.mxu0 }
  0x94   :  { %v97_v23 = vadd.f32 %v207_v21, %v96_v22 }
  0x96   :  { %v200_v24 = vmul.f32 -1.442695, %v97_v23 }
  0x98   :  { %209 = vpow2.f32 %v200_v24 }
  0x9e   :  { %v210_v25 = vpop.eup %209 }
  0x9f   :  { %v102_v26 = vadd.f32 1.0, %v210_v25 }
  0xa1   :  { %211 = vrcp.f32 %v102_v26  ;;  %v114_v30 = vand.u32 2147483648, %v102_v26  ;;  %v112_v32 = vand.u32 2147483647, %v102_v26  ;;  %vm108_vm2 = vweird.f32 %v102_v26 }
  0xa3   :  { %v115_v34 = vor.u32 1.1754944e-38, %v114_v30  ;;  %vm113_vm4 = vcmp.eq.f32.partialorder %v112_v32, 8.507059e+37 }
  0xa7   :  { %v212_v27 = vpop.eup %211 }
  0xa8   :  { %v104_v28 = vmul.f32 %v212_v27, %v102_v26  ;;  %vm109_vm1 = vweird.f32 %v212_v27 }
  0xa9   :  { %vm110_vm3 = vmor %vm108_vm2, %vm109_vm1 }
  0xaa   :  { %v105_v29 = vsub.f32 1.0, %v104_v28 }
  0xac   :  { %v106_v31 = vmul.f32 %v212_v27, %v105_v29 }
  0xae   :  { %v107_v33 = vadd.f32 %v212_v27, %v106_v31 }
  0xb0   :  { %v111_v35 = vsel %vm110_vm3, %v212_v27, %v107_v33 }
  0xb1   :  { %v116_v36 = vsel %vm113_vm4, %v115_v34, %v111_v35 }
  0xb2   :  { %154 = vmatmul.f32.vlgmr.msra.gmra.mxu1 %v116_v36 }
 0x12f   :  { %v155_v38 = vpop.f32.mrf.mxu1 }
 0x130   :  { %v156_v39 = vadd.f32 %v208_v37, %v155_v38 }
 0x132   :  { %158 = vmax.xlane.f32.xlu0 %v156_v39 }
 0x1a5   :  { %v159_v40 = vpop.xlane.xlu0 %158 }
 0x1a6   :  { %v160_v41 = vsub.f32 %v156_v39, %v159_v40 }
 0x1a8   :  { %v161_v42 = vmul.f32 1.442695, %v160_v41 }
 0x1aa   :  { %213 = vpow2.f32 %v161_v42 }
 0x1b0   :  { %v214_v43 = vpop.eup %213 }
 0x1b1   :  { %163 = vadd.xlane.f32.xlu0 %v214_v43 }
 0x224   :  { %v164_v44 = vpop.xlane.xlu0 %163 }
 0x225   :  { %215 = vrcp.f32 %v164_v44  ;;  %v176_v48 = vand.u32 2147483648, %v164_v44  ;;  %v174_v50 = vand.u32 2147483647, %v164_v44  ;;  %vm170_vm6 = vweird.f32 %v164_v44 }
 0x227   :  { %v177_v52 = vor.u32 1.1754944e-38, %v176_v48  ;;  %vm175_vm8 = vcmp.eq.f32.partialorder %v174_v50, 8.507059e+37 }
 0x22b   :  { %v216_v45 = vpop.eup %215 }
 0x22c   :  { %v166_v46 = vmul.f32 %v216_v45, %v164_v44  ;;  %vm171_vm5 = vweird.f32 %v216_v45 }
 0x22d   :  { %vm172_vm7 = vmor %vm170_vm6, %vm171_vm5 }
 0x22e   :  { %v167_v47 = vsub.f32 1.0, %v166_v46 }
 0x230   :  { %v168_v49 = vmul.f32 %v216_v45, %v167_v47 }
 0x232   :  { %v169_v51 = vadd.f32 %v216_v45, %v168_v49 }
 0x234   :  { %v173_v53 = vsel %vm172_vm7, %v216_v45, %v169_v51 }
 0x235   :  { %v178_v54 = vsel %vm175_vm8, %v177_v52, %v173_v53 }
 0x236   :  { %v179_v55 = vmul.f32 %v214_v43, %v178_v54 }
 0x238   :  { %180 = vst [vmem:[#allocation8] sm:$0xff] %v179_v55 }
 0x239   :  { %191 = dma.vmem_to_hbm [thread:$0]  %s187_s10, 128, %s189_s13, [#allocation4]  }
 0x23a   :  { %317 = dma.done.wait [#allocation4], 128  }
 0x23b   :  { %318 = vsyncadd [#allocation4], 4294967168 }
 0x23c   :  { %196 = vsyncpa [#allocation3], 1 }
 0x23d   :  { %197 = vsyncpa [#allocation6], 1 }
 0x23e   :  { %198 = vsyncpa [#allocation4], 1 }

</bundles_post_ra>
